<compile_context>
chip_gen: v6e
topology: v6e:2x2x1
jax: 0.10.0
libtpu: 0.0.40
codegen_flags: <defaults>
</compile_context>

<pallas_src>
import jax
import jax.numpy as jnp
from jax.experimental import pallas as pl
from jax.experimental.pallas import tpu as pltpu


def _round_up(x, m):
    return ((x + m - 1) // m) * m


def _choose_edge_tiling(e_edges, tile_e):
    """Pad the edge axis; collapse to a single grid step when it fits one tile."""
    e_min = _round_up(max(e_edges, 1), 128)
    if e_min <= tile_e:
        return e_min, e_min                      # tile_e == e_pad: one grid step
    return tile_e, _round_up(e_edges, tile_e)


# ---------------------------------------------------------------------------
# Path A: VMEM-resident stacked node table + fused one-hot gather (small N).
# ---------------------------------------------------------------------------
def _edge_score_onehot_kernel(src_ref, dst_ref, iota_ref, pq_ref, w2_ref,
                              b2_ref, out_ref, mask_ref):
    # src_ref, dst_ref: [1, TE]       int32  edge endpoints (edges on lane axis)
    # iota_ref:         [Npad, TE]    int32  grid-invariant iota (fetched once)
    # pq_ref:           [F, 2*Npad]   f32    stacked [W1a@h.T + b1 | W1b@h.T]
    # w2_ref:           [F, 1]        f32    W2 row as a column
    # b2_ref:           [1, 1]        f32    SMEM scalar
    # out_ref:          [1, TE]       f32    lane-dense scores
    # mask_ref:         [2*Npad, TE]  f32    VMEM scratch (stacked one-hot)
    n_pad = iota_ref.shape[0]
    iota = iota_ref[...]

    # Stacked one-hot gather mask: rows [0, Npad) select h[src] (pT half),
    # rows [Npad, 2*Npad) select h[dst] (qT half).  One 2*Npad-deep MXU
    # contraction replaces two Npad-deep matmuls + an [F, TE] add.
    mask_ref[0:n_pad, :] = (iota == src_ref[...]).astype(jnp.float32)
    mask_ref[n_pad:2 * n_pad, :] = (iota == dst_ref[...]).astype(jnp.float32)

    # hid[:, e] = pT[:, src[e]] + qT[:, dst[e]]   (b1 already folded into pT)
    hid = jnp.dot(pq_ref[...], mask_ref[...], preferred_element_type=jnp.float32)
    hid = jnp.maximum(hid, 0.0)                                   # ReLU (VPU)

    # W2 as VPU multiply + sublane (XLU) reduction; skips an M=1 MXU matmul.
    score = jnp.sum(hid * w2_ref[...], axis=0, keepdims=True)     # [1, TE]
    out_ref[...] = (score + b2_ref[0, 0]).astype(out_ref.dtype)


def _scores_onehot(h, src, dst, w1, b1, w2, b2, *, tile_e):
    n_nodes, f_feat = h.shape
    e_edges = src.shape[0]

    # Per-node precompute: moves the (2F x F) matmul off the edge axis.
    w1a = w1[:, :f_feat]                                          # [F, F] src half
    w1b = w1[:, f_feat:]                                          # [F, F] dst half
    p_t = (w1a @ h.T) + b1.reshape(f_feat, 1)                     # [F, N]  (+ b1)
    q_t = w1b @ h.T                                               # [F, N]

    n_pad = max(128, _round_up(n_nodes, 128))
    p_t = jnp.pad(p_t, ((0, 0), (0, n_pad - n_nodes)))
    q_t = jnp.pad(q_t, ((0, 0), (0, n_pad - n_nodes)))
    pq_t = jnp.concatenate([p_t, q_t], axis=1).astype(jnp.float32)  # [F, 2*Npad]

    # Cap the tile so iota (x2 buffers) + mask scratch stay under ~24 MiB
    # (keeps the same config safe on v7x's 64 MiB-per-TC VMEM).
    max_tile = max(128, ((24 << 20) // (4 * 3 * n_pad)) // 128 * 128)
    tile_e, e_pad = _choose_edge_tiling(e_edges, min(tile_e, max_tile))

    src_i = jnp.pad(src.astype(jnp.int32), (0, e_pad - e_edges)).reshape(1, e_pad)
    dst_i = jnp.pad(dst.astype(jnp.int32), (0, e_pad - e_edges)).reshape(1, e_pad)
    iota2d = jax.lax.broadcasted_iota(jnp.int32, (n_pad, tile_e), 0)

    w2_c = w2.reshape(f_feat, 1).astype(jnp.float32)
    b2_s = b2.reshape(1, 1).astype(jnp.float32)

    num_tiles = e_pad // tile_e

    # Explicit VMEM budget (resident tables + scratch + double-buffered tiles).
    vmem_bytes = 4 * (
        2 * (f_feat * 2 * n_pad)      # pq table (constant index, 2 buffers)
        + 2 * (n_pad * tile_e)        # iota input (constant index, 2 buffers)
        + 2 * n_pad * tile_e          # stacked one-hot scratch
        + 2 * 2 * tile_e              # src/dst index tiles (double-buffered)
        + 2 * tile_e                  # output tile (double-buffered)
        + 2 * f_feat * tile_e         # hid / temporaries
    )
    vmem_limit = int(min(max(vmem_bytes + (16 << 20), 32 << 20), 60 << 20))

    cost = pl.CostEstimate(
        flops=int(2 * f_feat * (2 * n_pad) * e_pad + 3 * f_feat * e_pad),
        transcendentals=0,
        bytes_accessed=int(4 * (2 * e_pad + n_pad * tile_e
                                + f_feat * 2 * n_pad + f_feat + 1 + e_pad)),
    )

    out = pl.pallas_call(
        _edge_score_onehot_kernel,
        out_shape=jax.ShapeDtypeStruct((1, e_pad), jnp.float32),
        grid_spec=pltpu.PrefetchScalarGridSpec(
            num_scalar_prefetch=0,
            grid=(num_tiles,),
            in_specs=[
                pl.BlockSpec((1, tile_e), lambda i: (0, i)),           # src ids
                pl.BlockSpec((1, tile_e), lambda i: (0, i)),           # dst ids
                pl.BlockSpec((n_pad, tile_e), lambda i: (0, 0)),       # iota (once)
                pl.BlockSpec((f_feat, 2 * n_pad), lambda i: (0, 0)),   # pq table
                pl.BlockSpec((f_feat, 1), lambda i: (0, 0)),           # w2 column
                pl.BlockSpec(memory_space=pltpu.MemorySpace.SMEM),     # b2 scalar
            ],
            out_specs=pl.BlockSpec((1, tile_e), lambda i: (0, i)),
            scratch_shapes=[
                pltpu.VMEM((2 * n_pad, tile_e), jnp.float32),          # stacked one-hot
            ],
        ),
        compiler_params=pltpu.CompilerParams(
            dimension_semantics=("parallel",),    # shards edge tiles across TCs on v7x
            vmem_limit_bytes=vmem_limit,
        ),
        cost_estimate=cost,
    )(src_i, dst_i, iota2d, pq_t, w2_c, b2_s)

    return out[0, :e_edges]                                            # squeeze(1)


# ---------------------------------------------------------------------------
# Path B: streamed wrapper-side gather (large N; mem-bound, no one-hots).
# ---------------------------------------------------------------------------
def _edge_score_stream_kernel(ps_ref, qs_ref, w2_ref, b2_ref, out_ref):
    # ps_ref, qs_ref: [F, TE]  gathered per-edge projections (b1 folded in ps)
    hid = jnp.maximum(ps_ref[...] + qs_ref[...], 0.0)                  # ReLU
    score = jnp.sum(hid * w2_ref[...], axis=0, keepdims=True)          # [1, TE]
    out_ref[...] = (score + b2_ref[0, 0]).astype(out_ref.dtype)


def _scores_streamed(h, src, dst, w1, b1, w2, b2, *, tile_e):
    n_nodes, f_feat = h.shape
    e_edges = src.shape[0]

    w1a = w1[:, :f_feat]
    w1b = w1[:, f_feat:]
    p_t = (w1a @ h.T) + b1.reshape(f_feat, 1)                          # [F, N]
    q_t = w1b @ h.T                                                    # [F, N]

    tile_e, e_pad = _choose_edge_tiling(e_edges, tile_e)
    src_i = jnp.pad(src.astype(jnp.int32), (0, e_pad - e_edges))
    dst_i = jnp.pad(dst.astype(jnp.int32), (0, e_pad - e_edges))

    # Wrapper-side gather (XLA, mem-bound); kernel streams lane-dense slabs.
    ps = jnp.take(p_t, src_i, axis=1).astype(jnp.float32)              # [F, Epad]
    qs = jnp.take(q_t, dst_i, axis=1).astype(jnp.float32)              # [F, Epad]

    w2_c = w2.reshape(f_feat, 1).astype(jnp.float32)
    b2_s = b2.reshape(1, 1).astype(jnp.float32)

    num_tiles = e_pad // tile_e
    vmem_bytes = 4 * (2 * 2 * f_feat * tile_e + 2 * tile_e + 2 * f_feat
                      + 2 * f_feat * tile_e)
    vmem_limit = int(min(max(vmem_bytes + (16 << 20), 32 << 20), 60 << 20))

    out = pl.pallas_call(
        _edge_score_stream_kernel,
        out_shape=jax.ShapeDtypeStruct((1, e_pad), jnp.float32),
        grid_spec=pltpu.PrefetchScalarGridSpec(
            num_scalar_prefetch=0,
            grid=(num_tiles,),
            in_specs=[
                pl.BlockSpec((f_feat, tile_e), lambda i: (0, i)),      # ps slab
                pl.BlockSpec((f_feat, tile_e), lambda i: (0, i)),      # qs slab
                pl.BlockSpec((f_feat, 1), lambda i: (0, 0)),           # w2 column
                pl.BlockSpec(memory_space=pltpu.MemorySpace.SMEM),     # b2 scalar
            ],
            out_specs=pl.BlockSpec((1, tile_e), lambda i: (0, i)),
        ),
        compiler_params=pltpu.CompilerParams(
            dimension_semantics=("parallel",),
            vmem_limit_bytes=vmem_limit,
        ),
    )(ps, qs, w2_c, b2_s)

    return out[0, :e_edges]


def mlp_predictor_scores(h, src, dst, w1, b1, w2, b2, *,
                         tile_e=2048, node_threshold=2048):
    """Per-edge scores W2(relu(W1([h[src] || h[dst]]))) -> [E]."""
    # TODO(synk): node_threshold / tile_e are coarse per-generation knobs;
    # sweep them (and lower node_threshold on v7x: 3.2 TB/s HBM + 64 MiB VMEM
    # shifts the crossover toward the streamed path).
    if h.shape[0] <= node_threshold:
        return _scores_onehot(h, src, dst, w1, b1, w2, b2, tile_e=tile_e)
    return _scores_streamed(h, src, dst, w1, b1, w2, b2, tile_e=tile_e)


def _reference(h, src, dst, w1, b1, w2, b2):
    x = jnp.concatenate([h[src], h[dst]], axis=1)
    hid = jnp.maximum(x @ w1.T + b1, 0.0)
    return (hid @ w2.T + b2)[:, 0]


if __name__ == "__main__":
    key = jax.random.PRNGKey(0)
    k_h, k_w1, k_b1, k_w2, k_b2, k_src, k_dst = jax.random.split(key, 7)

    h_feats = 32          # hidden size
    n_nodes = 16
    n_edges = 32

    # Node features.
    h = jax.random.normal(k_h, (n_nodes, h_feats), dtype=jnp.float32)

    # Parameter shapes from nn.Linear:
    #   W1: Linear(2*h_feats -> h_feats), W2: Linear(h_feats -> 1)
    w1 = jax.random.normal(k_w1, (h_feats, 2 * h_feats), dtype=jnp.float32) * 0.1
    b1 = jax.random.normal(k_b1, (h_feats,), dtype=jnp.float32) * 0.1
    w2 = jax.random.normal(k_w2, (1, h_feats), dtype=jnp.float32) * 0.1
    b2 = jax.random.normal(k_b2, (1,), dtype=jnp.float32) * 0.1

    # Synthetic edge list (graph connectivity).
    src = jax.random.randint(k_src, (n_edges,), 0, n_nodes)
    dst = jax.random.randint(k_dst, (n_edges,), 0, n_nodes)

    ref = _reference(h, src, dst, w1, b1, w2, b2)

    score_fn = jax.jit(mlp_predictor_scores,
                       static_argnames=("tile_e", "node_threshold"))

    # Main path: resident stacked table + fused one-hot gather (1 grid step here).
    scores = jax.block_until_ready(score_fn(h, src, dst, w1, b1, w2, b2))
    assert scores.shape == (n_edges,)
    assert jnp.allclose(scores, ref, atol=1e-4, rtol=1e-4), "onehot path mismatch"

    # Fallback path: streamed wrapper-side gather (forced, correctness check).
    scores_s = jax.block_until_ready(
        score_fn(h, src, dst, w1, b1, w2, b2, node_threshold=0))
    assert jnp.allclose(scores_s, ref, atol=1e-4, rtol=1e-4), "stream path mismatch"

    print("KERNEL_OK")
</pallas_src>

<mosaic_0001>
module attributes {stable_mosaic.version = 11 : i64} {
  func.func @_edge_score_onehot_kernel(%arg0: i32, %arg1: memref<1x128xi32, #tpu.memory_space<vmem>>, %arg2: memref<1x128xi32, #tpu.memory_space<vmem>>, %arg3: memref<128x128xi32, #tpu.memory_space<vmem>>, %arg4: memref<32x256xf32, #tpu.memory_space<vmem>>, %arg5: memref<32x1xf32, #tpu.memory_space<vmem>>, %arg6: memref<1x1xf32, #tpu.memory_space<smem>>, %arg7: memref<1x128xf32, #tpu.memory_space<vmem>>, %arg8: memref<256x128xf32, #tpu.memory_space<vmem>>) attributes {dimension_semantics = [#tpu.dimension_semantics<parallel>], iteration_bounds = array<i64: 1>, scalar_prefetch = 0 : i64, scratch_operands = 1 : i64, tpu.core_type = #tpu.core_type<tc>, window_params = [{transform_indices = @transform_0, window_bounds = array<i64: 1, 128>}, {transform_indices = @transform_1, window_bounds = array<i64: 1, 128>}, {pipeline_mode = #tpu.pipeline_mode<synchronous>, transform_indices = @transform_2, window_bounds = array<i64: 128, 128>}, {pipeline_mode = #tpu.pipeline_mode<synchronous>, transform_indices = @transform_3, window_bounds = array<i64: 32, 256>}, {pipeline_mode = #tpu.pipeline_mode<synchronous>, transform_indices = @transform_4, window_bounds = array<i64: 32, 1>}, {transform_indices = @transform_5, window_bounds = array<i64: 1, 1>}, {transform_indices = @transform_6, window_bounds = array<i64: 1, 128>}]} {
    %c0 = arith.constant 0 : index
    %c0_0 = arith.constant 0 : index
    %0 = vector.load %arg3[%c0, %c0_0] : memref<128x128xi32, #tpu.memory_space<vmem>>, vector<128x128xi32>
    %c0_1 = arith.constant 0 : index
    %c0_2 = arith.constant 0 : index
    %1 = vector.load %arg1[%c0_1, %c0_2] : memref<1x128xi32, #tpu.memory_space<vmem>>, vector<1x128xi32>
    %2 = vector.broadcast %1 : vector<1x128xi32> to vector<128x128xi32>
    %3 = arith.cmpi eq, %0, %2 : vector<128x128xi32>
    %4 = arith.extui %3 : vector<128x128xi1> to vector<128x128xi32>
    %5 = arith.sitofp %4 : vector<128x128xi32> to vector<128x128xf32>
    %c0_3 = arith.constant 0 : index
    %c0_4 = arith.constant 0 : index
    %6 = vector.load %arg8[%c0_3, %c0_4] : memref<256x128xf32, #tpu.memory_space<vmem>>, vector<128x128xf32>
    tpu.vector_store %arg8[%c0_3, %c0_4], %5 {strides = array<i32>} : memref<256x128xf32, #tpu.memory_space<vmem>>, vector<128x128xf32>,
    %c0_5 = arith.constant 0 : index
    %c0_6 = arith.constant 0 : index
    %7 = vector.load %arg2[%c0_5, %c0_6] : memref<1x128xi32, #tpu.memory_space<vmem>>, vector<1x128xi32>
    %8 = vector.broadcast %7 : vector<1x128xi32> to vector<128x128xi32>
    %9 = arith.cmpi eq, %0, %8 : vector<128x128xi32>
    %10 = arith.extui %9 : vector<128x128xi1> to vector<128x128xi32>
    %11 = arith.sitofp %10 : vector<128x128xi32> to vector<128x128xf32>
    %c128 = arith.constant 128 : index
    %c0_7 = arith.constant 0 : index
    %12 = vector.load %arg8[%c128, %c0_7] : memref<256x128xf32, #tpu.memory_space<vmem>>, vector<128x128xf32>
    tpu.vector_store %arg8[%c128, %c0_7], %11 {strides = array<i32>} : memref<256x128xf32, #tpu.memory_space<vmem>>, vector<128x128xf32>,
    %c0_8 = arith.constant 0 : index
    %c0_9 = arith.constant 0 : index
    %13 = vector.load %arg4[%c0_8, %c0_9] : memref<32x256xf32, #tpu.memory_space<vmem>>, vector<32x256xf32>
    %c0_10 = arith.constant 0 : index
    %c0_11 = arith.constant 0 : index
    %14 = vector.load %arg8[%c0_10, %c0_11] : memref<256x128xf32, #tpu.memory_space<vmem>>, vector<256x128xf32>
    %cst = arith.constant dense<0.000000e+00> : vector<32x128xf32>
    %15 = tpu.matmul %13, %14, %cst {dimension_numbers = #tpu.dot_dimension_numbers<[1], [0], [0], [1], [0, 0, 1, 1], [], []>} : vector<32x256xf32>, vector<256x128xf32>, vector<32x128xf32> -> vector<32x128xf32>
    %cst_12 = arith.constant 0.000000e+00 : f32
    %16 = vector.broadcast %cst_12 : f32 to vector<32x128xf32>
    %17 = arith.maximumf %15, %16 : vector<32x128xf32>
    %c0_13 = arith.constant 0 : index
    %c0_14 = arith.constant 0 : index
    %18 = vector.load %arg5[%c0_13, %c0_14] : memref<32x1xf32, #tpu.memory_space<vmem>>, vector<32x1xf32>
    %19 = vector.broadcast %18 : vector<32x1xf32> to vector<32x128xf32>
    %20 = arith.mulf %17, %19 : vector<32x128xf32>
    %cst_15 = arith.constant dense<0.000000e+00> : vector<128xf32>
    %21 = vector.multi_reduction <add>, %20, %cst_15 [0] : vector<32x128xf32> to vector<128xf32>
    %22 = vector.shape_cast %21 : vector<128xf32> to vector<1x128xf32>
    %c0_16 = arith.constant 0 : index
    %c0_17 = arith.constant 0 : index
    %23 = memref.load %arg6[%c0_16, %c0_17] : memref<1x1xf32, #tpu.memory_space<smem>>
    %24 = vector.broadcast %23 : f32 to vector<1x128xf32>
    %25 = arith.addf %22, %24 : vector<1x128xf32>
    %c0_18 = arith.constant 0 : index
    %c0_19 = arith.constant 0 : index
    %26 = vector.load %arg7[%c0_18, %c0_19] : memref<1x128xf32, #tpu.memory_space<vmem>>, vector<1x128xf32>
    tpu.vector_store %arg7[%c0_18, %c0_19], %25 {strides = array<i32>} : memref<1x128xf32, #tpu.memory_space<vmem>>, vector<1x128xf32>,
    return
  }
  func.func @transform_0(%arg0: i32) -> (i32, i32) {
    %c0_i32 = arith.constant 0 : i32
    %c0_i32_0 = arith.constant 0 : i32
    return %c0_i32, %arg0 : i32, i32
  }
  func.func @transform_1(%arg0: i32) -> (i32, i32) {
    %c0_i32 = arith.constant 0 : i32
    %c0_i32_0 = arith.constant 0 : i32
    return %c0_i32, %arg0 : i32, i32
  }
  func.func @transform_2(%arg0: i32) -> (i32, i32) {
    %c0_i32 = arith.constant 0 : i32
    %c0_i32_0 = arith.constant 0 : i32
    %c0_i32_1 = arith.constant 0 : i32
    return %c0_i32, %c0_i32_0 : i32, i32
  }
  func.func @transform_3(%arg0: i32) -> (i32, i32) {
    %c0_i32 = arith.constant 0 : i32
    %c0_i32_0 = arith.constant 0 : i32
    %c0_i32_1 = arith.constant 0 : i32
    return %c0_i32, %c0_i32_0 : i32, i32
  }
  func.func @transform_4(%arg0: i32) -> (i32, i32) {
    %c0_i32 = arith.constant 0 : i32
    %c0_i32_0 = arith.constant 0 : i32
    %c0_i32_1 = arith.constant 0 : i32
    return %c0_i32, %c0_i32_0 : i32, i32
  }
  func.func @transform_5(%arg0: i32) -> (i32, i32) {
    %c0_i32 = arith.constant 0 : i32
    %c0_i32_0 = arith.constant 0 : i32
    %c0_i32_1 = arith.constant 0 : i32
    return %c0_i32, %c0_i32_0 : i32, i32
  }
  func.func @transform_6(%arg0: i32) -> (i32, i32) {
    %c0_i32 = arith.constant 0 : i32
    %c0_i32_0 = arith.constant 0 : i32
    return %c0_i32, %arg0 : i32, i32
  }
}

</mosaic_0001>

<bundles_post_ra>
// kernel: mlp_predictor_scores.1
= control target key start
LH: loop header
LB: loop body
LE: loop exit
PB: predicated region body
PF: predicated region fallthrough
CT: control target
= control target key end

     0   :  { %v498_v3 = vmov 0   ;;  %v499_v6 = vmov 1.0   ;;  %s731_s1 = inlined_call_operand.vmem [shape: s32[1,128], index: 1, kind: input, shape index: {}]   ;;  %s732_s2 = inlined_call_operand.vmem [shape: s32[128,128], index: 2, kind: input, shape index: {}]   ;;  %s733_s0 = inlined_call_operand.vmem [shape: s32[1,128], index: 0, kind: input, shape index: {}]   ;;  %s734_s3 = inlined_call_operand.vmem [shape: f32[32,256], index: 3, kind: input, shape index: {}]   ;;  %s735_s4 = inlined_call_operand.vmem [shape: f32[32,1], index: 4, kind: input, shape index: {}]   ;;  %s736_s5 = inlined_call_operand.<no memory space> [shape: f32[1,1], index: 5, kind: input, shape index: {}]   ;;  %s737_s6 = inlined_call_operand.vmem [shape: f32[1,128], index: 6, kind: output, shape index: {}]  }
   0x1   :  { %v39_v0 = vld [vmem:[%s732_s2 + $0x78] sm:$0xff]  ;;  %v541_v1 = vld [vmem:[%s731_s1] ss:$0 sm:$0xff]  ;;  %496 = vset.pattern.permute.xlu0 %v498_v3  ;;  %497 = vset.pattern.permute.xlu1 %v498_v3  ;;  %v38_v4 = vld [vmem:[%s732_s2 + $0x70] sm:$0xff] }
   0x2   :  { %v546_v2 = vld [vmem:[%s733_s0] ss:$0 sm:$0xff]  ;;  %vm129_vm0 = vcmp.eq.s32.totalorder %v39_v0, %v541_v1  ;;  %v37_v5 = vld [vmem:[%s732_s2 + $0x68] sm:$0xff]  ;;  %vm128_vm2 = vcmp.eq.s32.totalorder %v38_v4, %v541_v1  ;;  %v35_v8 = vld [vmem:[%s732_s2 + $0x58] sm:$0xff] }
   0x3   :  { %vm60_vm1 = vcmp.eq.s32.totalorder %v39_v0, %v546_v2  ;;  %418 = vmatprep.subr.msk.mxu0 %vm129_vm0, %v499_v6  ;;  %462 = vmatprep.subr.msk.mxu1 %vm129_vm0, %v499_v6  ;;  %vm59_vm3 = vcmp.eq.s32.totalorder %v38_v4, %v546_v2  ;;  %v36_v7 = vld [vmem:[%s732_s2 + $0x60] sm:$0xff]  ;;  %vm127_vm4 = vcmp.eq.s32.totalorder %v37_v5, %v541_v1  ;;  %v34_v9 = vld [vmem:[%s732_s2 + $0x50] sm:$0xff]  ;;  %v33_v10 = vld [vmem:[%s732_s2 + $0x48] sm:$0xff]  ;;  %v345_v0 = vstv %s736_s5 }
   0x4   :  { %419 = vmatpush3.msk.msra.mxu0 %vm60_vm1, %v499_v6  ;;  %478 = vmatpush3.msk.msra.mxu1 %vm60_vm1, %v499_v6  ;;  %vm58_vm5 = vcmp.eq.s32.totalorder %v37_v5, %v546_v2  ;;  %vm126_vm6 = vcmp.eq.s32.totalorder %v36_v7, %v541_v1  ;;  %vm57_vm7 = vcmp.eq.s32.totalorder %v36_v7, %v546_v2  ;;  %v32_v11 = vld [vmem:[%s732_s2 + $0x40] sm:$0xff]  ;;  %v31_v12 = vld [vmem:[%s732_s2 + $0x38] sm:$0xff]  ;;  %v30_v13 = vld [vmem:[%s732_s2 + $0x30] sm:$0xff] }
   0x5   :  { %420 = vmatprep.subr.msk.mxu0 %vm128_vm2, %v499_v6  ;;  %463 = vmatprep.subr.msk.mxu1 %vm128_vm2, %v499_v6  ;;  %vm125_vm8 = vcmp.eq.s32.totalorder %v35_v8, %v541_v1  ;;  %vm56_vm9 = vcmp.eq.s32.totalorder %v35_v8, %v546_v2  ;;  %vm124_vm10 = vcmp.eq.s32.totalorder %v34_v9, %v541_v1  ;;  %v29_v14 = vld [vmem:[%s732_s2 + $0x28] sm:$0xff]  ;;  %v28_v15 = vld [vmem:[%s732_s2 + $0x20] sm:$0xff]  ;;  %v27_v16 = vld [vmem:[%s732_s2 + $0x18] sm:$0xff] }
   0x6   :  { %421 = vmatpush3.msk.msra.mxu0 %vm59_vm3, %v499_v6  ;;  %479 = vmatpush3.msk.msra.mxu1 %vm59_vm3, %v499_v6  ;;  %vm55_vm11 = vcmp.eq.s32.totalorder %v34_v9, %v546_v2  ;;  %vm123_vm12 = vcmp.eq.s32.totalorder %v33_v10, %v541_v1  ;;  %vm54_vm13 = vcmp.eq.s32.totalorder %v33_v10, %v546_v2  ;;  %v26_v17 = vld [vmem:[%s732_s2 + $0x10] sm:$0xff]  ;;  %v25_v18 = vld [vmem:[%s732_s2 + $0x8] sm:$0xff]  ;;  %v24_v19 = vld [vmem:[%s732_s2] sm:$0xff] }
   0x7   :  { %422 = vmatprep.subr.msk.mxu0 %vm127_vm4, %v499_v6  ;;  %464 = vmatprep.subr.msk.mxu1 %vm127_vm4, %v499_v6  ;;  %vm122_vm14 = vcmp.eq.s32.totalorder %v32_v11, %v541_v1  ;;  %vm53_vm15 = vcmp.eq.s32.totalorder %v32_v11, %v546_v2  ;;  %vm121_vm0 = vcmp.eq.s32.totalorder %v31_v12, %v541_v1  ;;  %v179_v20 = vld [vmem:[%s734_s3 + $0x8] sm:$0xff]  ;;  %v178_v22 = vld [vmem:[%s734_s3] sm:$0xff]  ;;  %v181_v24 = vld [vmem:[%s734_s3 + $0x18] sm:$0xff] }
   0x8   :  { %423 = vmatpush3.msk.msra.mxu0 %vm58_vm5, %v499_v6  ;;  %480 = vmatpush3.msk.msra.mxu1 %vm58_vm5, %v499_v6  ;;  %vm52_vm1 = vcmp.eq.s32.totalorder %v31_v12, %v546_v2  ;;  %vm120_vm2 = vcmp.eq.s32.totalorder %v30_v13, %v541_v1  ;;  %vm51_vm3 = vcmp.eq.s32.totalorder %v30_v13, %v546_v2  ;;  %v183_v21 = vld [vmem:[%s734_s3 + $0x28] sm:$0xff]  ;;  %v182_v23 = vld [vmem:[%s734_s3 + $0x20] sm:$0xff]  ;;  %v185_v25 = vld [vmem:[%s734_s3 + $0x38] sm:$0xff] }
   0x9   :  { %424 = vmatprep.subr.msk.mxu0 %vm126_vm6, %v499_v6  ;;  %465 = vmatprep.subr.msk.mxu1 %vm126_vm6, %v499_v6  ;;  %vm119_vm4 = vcmp.eq.s32.totalorder %v29_v14, %v541_v1  ;;  %vm50_vm5 = vcmp.eq.s32.totalorder %v29_v14, %v546_v2  ;;  %vm118_vm6 = vcmp.eq.s32.totalorder %v28_v15, %v541_v1  ;;  %v307_v26 = vld [vmem:[%s735_s4] sm:$0xff]  ;;  %v309_v27 = vld [vmem:[%s735_s4 + $0x10] sm:$0xff]  ;;  %v308_v30 = vld [vmem:[%s735_s4 + $0x8] sm:$0xff] }
   0xa   :  { %425 = vmatpush3.msk.msra.mxu0 %vm57_vm7, %v499_v6  ;;  %481 = vmatpush3.msk.msra.mxu1 %vm57_vm7, %v499_v6  ;;  %vm49_vm7 = vcmp.eq.s32.totalorder %v28_v15, %v546_v2  ;;  %v180_v28 = vld [vmem:[%s734_s3 + $0x10] sm:$0xff]  ;;  %v310_v31 = vld [vmem:[%s735_s4 + $0x18] sm:$0xff] }
   0xb   :  { %426 = vmatprep.subr.msk.mxu0 %vm125_vm8, %v499_v6  ;;  %466 = vmatprep.subr.msk.mxu1 %vm125_vm8, %v499_v6  ;;  %vm117_vm8 = vcmp.eq.s32.totalorder %v27_v16, %v541_v1  ;;  %v184_v29 = vld [vmem:[%s734_s3 + $0x30] sm:$0xff] }
   0xc   :  { %427 = vmatpush3.msk.msra.mxu0 %vm56_vm9, %v499_v6  ;;  %482 = vmatpush3.msk.msra.mxu1 %vm56_vm9, %v499_v6  ;;  %vm48_vm9 = vcmp.eq.s32.totalorder %v27_v16, %v546_v2 }
   0xd   :  { %428 = vmatprep.subr.msk.mxu0 %vm124_vm10, %v499_v6  ;;  %467 = vmatprep.subr.msk.mxu1 %vm124_vm10, %v499_v6  ;;  %vm116_vm10 = vcmp.eq.s32.totalorder %v26_v17, %v541_v1 }
   0xe   :  { %429 = vmatpush3.msk.msra.mxu0 %vm55_vm11, %v499_v6  ;;  %483 = vmatpush3.msk.msra.mxu1 %vm55_vm11, %v499_v6  ;;  %vm47_vm11 = vcmp.eq.s32.totalorder %v26_v17, %v546_v2 }
   0xf   :  { %430 = vmatprep.subr.msk.mxu0 %vm123_vm12, %v499_v6  ;;  %468 = vmatprep.subr.msk.mxu1 %vm123_vm12, %v499_v6  ;;  %vm115_vm12 = vcmp.eq.s32.totalorder %v25_v18, %v541_v1 }
  0x10   :  { %431 = vmatpush3.msk.msra.mxu0 %vm54_vm13, %v499_v6  ;;  %484 = vmatpush3.msk.msra.mxu1 %vm54_vm13, %v499_v6  ;;  %vm46_vm13 = vcmp.eq.s32.totalorder %v25_v18, %v546_v2 }
  0x11   :  { %432 = vmatprep.subr.msk.mxu0 %vm122_vm14, %v499_v6  ;;  %469 = vmatprep.subr.msk.mxu1 %vm122_vm14, %v499_v6  ;;  %vm114_vm14 = vcmp.eq.s32.totalorder %v24_v19, %v541_v1 }
  0x12   :  { %433 = vmatpush3.msk.msra.mxu0 %vm53_vm15, %v499_v6  ;;  %485 = vmatpush3.msk.msra.mxu1 %vm53_vm15, %v499_v6  ;;  %vm45_vm15 = vcmp.eq.s32.totalorder %v24_v19, %v546_v2 }
  0x13   :  { %434 = vmatprep.subr.msk.mxu0 %vm121_vm0, %v499_v6  ;;  %470 = vmatprep.subr.msk.mxu1 %vm121_vm0, %v499_v6 }
  0x14   :  { %435 = vmatpush3.msk.msra.mxu0 %vm52_vm1, %v499_v6  ;;  %486 = vmatpush3.msk.msra.mxu1 %vm52_vm1, %v499_v6 }
  0x15   :  { %436 = vmatprep.subr.msk.mxu0 %vm120_vm2, %v499_v6  ;;  %471 = vmatprep.subr.msk.mxu1 %vm120_vm2, %v499_v6 }
  0x16   :  { %437 = vmatpush3.msk.msra.mxu0 %vm51_vm3, %v499_v6  ;;  %487 = vmatpush3.msk.msra.mxu1 %vm51_vm3, %v499_v6 }
  0x17   :  { %438 = vmatprep.subr.msk.mxu0 %vm119_vm4, %v499_v6  ;;  %472 = vmatprep.subr.msk.mxu1 %vm119_vm4, %v499_v6 }
  0x18   :  { %439 = vmatpush3.msk.msra.mxu0 %vm50_vm5, %v499_v6  ;;  %488 = vmatpush3.msk.msra.mxu1 %vm50_vm5, %v499_v6 }
  0x19   :  { %440 = vmatprep.subr.msk.mxu0 %vm118_vm6, %v499_v6  ;;  %473 = vmatprep.subr.msk.mxu1 %vm118_vm6, %v499_v6 }
  0x1a   :  { %441 = vmatpush3.msk.msra.mxu0 %vm49_vm7, %v499_v6  ;;  %489 = vmatpush3.msk.msra.mxu1 %vm49_vm7, %v499_v6 }
  0x1b   :  { %442 = vmatprep.subr.msk.mxu0 %vm117_vm8, %v499_v6  ;;  %474 = vmatprep.subr.msk.mxu1 %vm117_vm8, %v499_v6 }
  0x1c   :  { %443 = vmatpush3.msk.msra.mxu0 %vm48_vm9, %v499_v6  ;;  %490 = vmatpush3.msk.msra.mxu1 %vm48_vm9, %v499_v6 }
  0x1d   :  { %444 = vmatprep.subr.msk.mxu0 %vm116_vm10, %v499_v6  ;;  %475 = vmatprep.subr.msk.mxu1 %vm116_vm10, %v499_v6 }
  0x1e   :  { %445 = vmatpush3.msk.msra.mxu0 %vm47_vm11, %v499_v6  ;;  %491 = vmatpush3.msk.msra.mxu1 %vm47_vm11, %v499_v6 }
  0x1f   :  { %446 = vmatprep.subr.msk.mxu0 %vm115_vm12, %v499_v6  ;;  %476 = vmatprep.subr.msk.mxu1 %vm115_vm12, %v499_v6 }
  0x20   :  { %447 = vmatpush3.msk.msra.mxu0 %vm46_vm13, %v499_v6  ;;  %492 = vmatpush3.msk.msra.mxu1 %vm46_vm13, %v499_v6 }
  0x21   :  { %448 = vmatprep.subr.msk.mxu0 %vm114_vm14, %v499_v6  ;;  %477 = vmatprep.subr.msk.mxu1 %vm114_vm14, %v499_v6 }
  0x22   :  { %449 = vmatpush3.msk.msra.mxu0 %vm45_vm15, %v499_v6  ;;  %493 = vmatpush3.msk.msra.mxu1 %vm45_vm15, %v499_v6 }
  0x23   :  { %282 = vmatprep.mubr.f32.mxu0 %v179_v20  ;;  %292 = vmatprep.mubr.f32.mxu1 %v183_v21 }
  0x24   :  { %283 = vmatmul.mubr.f32.vlgmr.msra.gmra.mxu0 %v178_v22  ;;  %293 = vmatmul.mubr.f32.vlgmr.msra.gmra.mxu1 %v182_v23 }
  0x25   :  { %287 = vmatprep.mubr.f32.mxu0 %v181_v24  ;;  %297 = vmatprep.mubr.f32.mxu1 %v185_v25 }
  0x26   :  { %313 = vperm.xlu0 %496, %v307_v26   ;;  %323 = vperm.xlu1 %497, %v309_v27  }
  0x28   :  { %288 = vmatmul.mubr.f32.gmra.mxu0 %v180_v28  ;;  %298 = vmatmul.mubr.f32.gmra.mxu1 %v184_v29 }
  0x2a   :  { %318 = vperm.xlu0 %496, %v308_v30   ;;  %328 = vperm.xlu1 %497, %v310_v31  }
  0xa1   :  { %v314_v36 = vpop.permute.xlu0 %313  ;;  %v324_v41 = vpop.permute.xlu1 %323 }
  0xa5   :  { %v319_v49 = vpop.permute.xlu0 %318  ;;  %v329_v53 = vpop.permute.xlu1 %328 }
  0xe4   :  { %v450_v32 = vpop.f32.mrf.mxu0  ;;  %v456_v33 = vpop.f32.mrf.mxu1 }
  0xe6   :  { %v451_v34 = vpop.f32.mrf.mxu0  ;;  %v457_v35 = vpop.f32.mrf.mxu1 }
  0xe7   :  { %v452_v37 = vadd.f32 %v451_v34, %v450_v32  ;;  %v458_v40 = vadd.f32 %v457_v35, %v456_v33 }
  0xe8   :  { %v453_v38 = vpop.f32.mrf.mxu0  ;;  %v459_v39 = vpop.f32.mrf.mxu1 }
  0xe9   :  { %v303_v44 = vmax.f32 %v452_v37, 0.0  ;;  %v305_v47 = vmax.f32 %v458_v40, 0.0 }
  0xea   :  { %v454_v42 = vpop.f32.mrf.mxu0  ;;  %v460_v43 = vpop.f32.mrf.mxu1 }
  0xeb   :  { %v455_v45 = vadd.f32 %v454_v42, %v453_v38  ;;  %v461_v46 = vadd.f32 %v460_v43, %v459_v39  ;;  %v331_v50 = vmul.f32 %v314_v36, %v303_v44  ;;  %v333_v54 = vmul.f32 %v324_v41, %v305_v47 }
  0xed   :  { %v304_v48 = vmax.f32 %v455_v45, 0.0  ;;  %v306_v52 = vmax.f32 %v461_v46, 0.0 }
  0xef   :  { %v332_v51 = vmul.f32 %v319_v49, %v304_v48  ;;  %v334_v56 = vmul.f32 %v329_v53, %v306_v52 }
  0xf1   :  { %v335_v55 = vadd.f32 %v332_v51, %v331_v50 }
  0xf3   :  { %v336_v57 = vadd.f32 %v335_v55, %v333_v54 }
  0xf5   :  { %v337_v58 = vadd.f32 %v336_v57, %v334_v56 }
  0xf7   :  { %v338_v59 = vrot.slane %v337_v58, 4 }
  0xf9   :  { %v339_v60 = vadd.f32 %v338_v59, %v337_v58 }
  0xfb   :  { %v340_v61 = vrot.slane %v339_v60, 2 }
  0xfd   :  { %v341_v62 = vadd.f32 %v340_v61, %v339_v60 }
  0xff   :  { %v342_v63 = vrot.slane %v341_v62, 1 }
 0x101   :  { %v343_v1 = vadd.f32 %v342_v63, %v341_v62 }
 0x103   :  { %v346_v2 = vadd.f32 %v345_v0, %v343_v1 }
 0x105   :  { %347 = vst [vmem:[%s737_s6] sm:$0x1] %v346_v2 }

</bundles_post_ra>
